<compile_context>
chip_gen: v7x
topology: tpu7x:2x2x1
jax: 0.10.0
libtpu: 0.0.40
codegen_flags: <defaults>
</compile_context>

<pallas_src>
import jax
import jax.numpy as jnp
from jax.experimental import pallas as pl
from jax.experimental.pallas import tpu as pltpu


def _make_mymlp_kernel(inv_hw):
    """Builds the fused kernel; inv_hw = 1 / (H*W) baked in as a constant."""

    def kernel(x_ref, w1_ref, b1_ref, w2_ref, b2_ref, wa_ref, ba_ref,
               y_ref, a_ref, pool_ref):
        """Grid = (batch, hw_tile). Channel-major, lane-dense along H*W.

        x_ref  : (1, C, THW)    input tile (compute dtype)
        w1_ref : (Hd, C)        Linear1 weight, PyTorch (out, in) layout
        b1_ref : (Hd, 1)   f32  Linear1 bias (column -> lane broadcast)
        w2_ref : (Cout, Hd)     Linear2 weight
        b2_ref : (Cout, 1) f32  Linear2 bias
        wa_ref : (Cout, C) f32  1x1-conv weight
        ba_ref : (Cout, 1) f32  1x1-conv bias
        y_ref  : (1, Cout, THW) per-pixel MLP output tile
        a_ref  : (1, Cout, 1)   f32 POST-sigmoid channel attention (last tile)
        pool_ref: VMEM (C, 1) f32 scratch — running sum of x over H*W
        """
        t = pl.program_id(1)
        x = x_ref[0]                                               # (C, THW)

        # ---- per-pixel MLP: Linear -> ReLU -> Linear, f32 accumulation -----
        h = jnp.dot(w1_ref[...], x, preferred_element_type=jnp.float32)
        h = jnp.maximum(h + b1_ref[...], 0.0)                      # (Hd, THW) f32
        y = jnp.dot(w2_ref[...], h.astype(w2_ref.dtype),
                    preferred_element_type=jnp.float32) + b2_ref[...]
        y_ref[0] = y.astype(y_ref.dtype)                           # (Cout, THW)

        # ---- global-average-pool accumulator over the HW grid axis ---------
        @pl.when(t == 0)
        def _():
            pool_ref[...] = jnp.zeros_like(pool_ref)
        pool_ref[...] += jnp.sum(x.astype(jnp.float32), axis=1, keepdims=True)

        # ---- last tile: scale by 1/HW, 1x1 conv, sigmoid --------------------
        @pl.when(t == pl.num_programs(1) - 1)
        def _():
            pooled = pool_ref[...] * inv_hw                        # (C, 1) f32
            a = jnp.dot(wa_ref[...], pooled,
                        preferred_element_type=jnp.float32) + ba_ref[...]
            a_ref[0] = jax.nn.sigmoid(a).astype(a_ref.dtype)       # (Cout, 1)

    return kernel


def _pick_tile_hw(HW, C, Hd, Cout, io_itemsize):
    """Largest 128-multiple tile dividing HW that fits a ~24 MiB VMEM budget
    (double-buffered x + y tiles plus the f32 hidden temp) — safe for v7x's
    64 MiB VMEM and well within v5e/v6e."""
    budget = 24 * 1024 * 1024
    per_lane = 2 * (C + Cout) * io_itemsize + Hd * 4
    for t in (4096, 2048, 1024, 512, 256, 128):
        if HW % t == 0 and t * per_lane <= budget:
            return t
    return HW  # fallback: whole image (HW not a multiple of 128)


def mymlp_forward(x_nchw, params, *, compute_dtype=None, tile_hw=None):
    """NCHW in, (NCHW, (B, Cout, 1, 1)) out, matching the PyTorch module.

    compute_dtype: dtype for x / w1 / w2 / y HBM traffic (e.g. jnp.bfloat16);
                   accumulation and the bias/ReLU/sigmoid epilogue stay f32.
                   Attention output is always f32.
    """
    B, C, H, W = x_nchw.shape
    Hd, Cin = params["w1"].shape
    Cout = params["w2"].shape[0]
    assert Cin == C
    # The PyTorch module reshapes the MLP output back to (B, H, W, C), which
    # only works when output_dim == input_dim.
    assert Cout == C, "myMLP requires output_dim == input_dim"
    HW = H * W

    if compute_dtype is None:
        compute_dtype = x_nchw.dtype
    compute_dtype = jnp.dtype(compute_dtype)
    if tile_hw is None:
        tile_hw = _pick_tile_hw(HW, C, Hd, Cout, compute_dtype.itemsize)
    assert HW % tile_hw == 0, "tile_hw must divide H*W"
    num_tiles = HW // tile_hw

    # Metadata-only reshape (no HBM transpose); small weight casts happen once.
    x_cf = x_nchw.reshape(B, C, HW).astype(compute_dtype)
    w1 = params["w1"].astype(compute_dtype)
    w2 = params["w2"].astype(compute_dtype)
    b1 = params["b1"].reshape(Hd, 1).astype(jnp.float32)
    b2 = params["b2"].reshape(Cout, 1).astype(jnp.float32)
    wa = params["wa"].astype(jnp.float32)
    ba = params["ba"].reshape(Cout, 1).astype(jnp.float32)

    kernel = _make_mymlp_kernel(1.0 / HW)

    y, attn = pl.pallas_call(
        kernel,
        out_shape=(
            jax.ShapeDtypeStruct((B, Cout, HW), compute_dtype),
            jax.ShapeDtypeStruct((B, Cout, 1), jnp.float32),
        ),
        grid_spec=pltpu.PrefetchScalarGridSpec(
            num_scalar_prefetch=0,
            grid=(B, num_tiles),
            in_specs=[
                pl.BlockSpec((1, C, tile_hw), lambda b, t: (b, 0, t)),
                pl.BlockSpec((Hd, C), lambda b, t: (0, 0)),
                pl.BlockSpec((Hd, 1), lambda b, t: (0, 0)),
                pl.BlockSpec((Cout, Hd), lambda b, t: (0, 0)),
                pl.BlockSpec((Cout, 1), lambda b, t: (0, 0)),
                pl.BlockSpec((Cout, C), lambda b, t: (0, 0)),
                pl.BlockSpec((Cout, 1), lambda b, t: (0, 0)),
            ],
            out_specs=[
                pl.BlockSpec((1, Cout, tile_hw), lambda b, t: (b, 0, t)),
                pl.BlockSpec((1, Cout, 1), lambda b, t: (b, 0, 0)),
            ],
            scratch_shapes=[pltpu.VMEM((C, 1), jnp.float32)],
        ),
        compiler_params=pltpu.CompilerParams(
            # B parallel (megacore on v7x), HW sequential (pool accumulator).
            dimension_semantics=("parallel", "arbitrary"),
            vmem_limit_bytes=48 * 1024 * 1024,
        ),
    )(x_cf, w1, b1, w2, b2, wa, ba)

    return y.reshape(B, Cout, H, W), attn.reshape(B, Cout, 1, 1)


def _reference_forward(x_nchw, params):
    """Pure-JAX reference replicating the PyTorch forward (f32)."""
    B, C, H, W = x_nchw.shape
    xf = jnp.transpose(x_nchw, (0, 2, 3, 1)).reshape(-1, C)        # (B*H*W, C)
    h = jnp.maximum(xf @ params["w1"].T + params["b1"], 0.0)
    y = h @ params["w2"].T + params["b2"]
    out = jnp.transpose(y.reshape(B, H, W, C), (0, 3, 1, 2))
    pooled = jnp.mean(x_nchw, axis=(2, 3))                         # (B, C)
    attn = jax.nn.sigmoid(pooled @ params["wa"].T + params["ba"])
    return out, attn.reshape(B, -1, 1, 1)


def make_params(key, input_dim, hidden_dim, output_dim):
    ks = jax.random.split(key, 6)
    return {
        # PyTorch layouts: Linear weight (out, in); Conv2d 1x1 weight -> (out, in)
        "w1": jax.random.normal(ks[0], (hidden_dim, input_dim), jnp.float32) * 0.3,
        "b1": jax.random.normal(ks[1], (hidden_dim,), jnp.float32) * 0.1,
        "w2": jax.random.normal(ks[2], (output_dim, hidden_dim), jnp.float32) * 0.3,
        "b2": jax.random.normal(ks[3], (output_dim,), jnp.float32) * 0.1,
        "wa": jax.random.normal(ks[4], (output_dim, input_dim), jnp.float32) * 0.3,
        "ba": jax.random.normal(ks[5], (output_dim,), jnp.float32) * 0.1,
    }


if __name__ == "__main__":
    key = jax.random.PRNGKey(0)
    k_x, k_p = jax.random.split(key)

    B, C, H, W = 2, 4, 16, 16          # input_dim = output_dim = 4
    hidden_dim = 32
    x = jax.random.normal(k_x, (B, C, H, W), jnp.float32)
    params = make_params(k_p, C, hidden_dim, C)
    ref_out, ref_attn = _reference_forward(x, params)

    # f32 path, tile_hw=128 -> 2 HW tiles: exercises the pool accumulator
    # (zero at t==0, sum per tile, finalize at t==last).
    out, attn = mymlp_forward(x, params, tile_hw=128)
    out = jax.block_until_ready(out)
    attn = jax.block_until_ready(attn)
    assert out.shape == (B, C, H, W)
    assert attn.shape == (B, C, 1, 1)
    assert jnp.allclose(out, ref_out, atol=1e-4, rtol=1e-4), "mlp branch mismatch (f32)"
    assert jnp.allclose(attn, ref_attn, atol=1e-4, rtol=1e-4), "attention branch mismatch (f32)"

    # bf16 I/O path (f32 accumulation / epilogue), auto-picked tile size.
    out_bf, attn_bf = mymlp_forward(x, params, compute_dtype=jnp.bfloat16)
    out_bf = jax.block_until_ready(out_bf)
    attn_bf = jax.block_until_ready(attn_bf)
    assert out_bf.shape == (B, C, H, W) and out_bf.dtype == jnp.bfloat16
    assert attn_bf.shape == (B, C, 1, 1)
    assert jnp.allclose(out_bf.astype(jnp.float32), ref_out, atol=0.15, rtol=0.1), \
        "mlp branch mismatch (bf16)"
    assert jnp.allclose(attn_bf.astype(jnp.float32), ref_attn, atol=0.02), \
        "attention branch mismatch (bf16)"

    print("KERNEL_OK")
</pallas_src>

<mosaic_0001>
module attributes {stable_mosaic.version = 11 : i64} {
  func.func @kernel(%arg0: i32, %arg1: i32, %arg2: memref<1x4x128xf32, #tpu.memory_space<vmem>>, %arg3: memref<32x4xf32, #tpu.memory_space<vmem>>, %arg4: memref<32x1xf32, #tpu.memory_space<vmem>>, %arg5: memref<4x32xf32, #tpu.memory_space<vmem>>, %arg6: memref<4x1xf32, #tpu.memory_space<vmem>>, %arg7: memref<4x4xf32, #tpu.memory_space<vmem>>, %arg8: memref<4x1xf32, #tpu.memory_space<vmem>>, %arg9: memref<1x4x128xf32, #tpu.memory_space<vmem>>, %arg10: memref<1x4x1xf32, #tpu.memory_space<vmem>>, %arg11: memref<4x1xf32, #tpu.memory_space<vmem>>) attributes {dimension_semantics = [#tpu.dimension_semantics<parallel>, #tpu.dimension_semantics<arbitrary>], iteration_bounds = array<i64: 2, 2>, scalar_prefetch = 0 : i64, scratch_operands = 1 : i64, tpu.core_type = #tpu.core_type<tc>, window_params = [{transform_indices = @transform_0, window_bounds = array<i64: 1, 4, 128>}, {pipeline_mode = #tpu.pipeline_mode<synchronous>, transform_indices = @transform_1, window_bounds = array<i64: 32, 4>}, {pipeline_mode = #tpu.pipeline_mode<synchronous>, transform_indices = @transform_2, window_bounds = array<i64: 32, 1>}, {pipeline_mode = #tpu.pipeline_mode<synchronous>, transform_indices = @transform_3, window_bounds = array<i64: 4, 32>}, {pipeline_mode = #tpu.pipeline_mode<synchronous>, transform_indices = @transform_4, window_bounds = array<i64: 4, 1>}, {pipeline_mode = #tpu.pipeline_mode<synchronous>, transform_indices = @transform_5, window_bounds = array<i64: 4, 4>}, {pipeline_mode = #tpu.pipeline_mode<synchronous>, transform_indices = @transform_6, window_bounds = array<i64: 4, 1>}, {transform_indices = @transform_7, window_bounds = array<i64: 1, 4, 128>}, {transform_indices = @transform_8, window_bounds = array<i64: 1, 4, 1>}]} {
    %c0 = arith.constant 0 : index
    %c0_0 = arith.constant 0 : index
    %c0_1 = arith.constant 0 : index
    %0 = vector.load %arg2[%c0, %c0_0, %c0_1] : memref<1x4x128xf32, #tpu.memory_space<vmem>>, vector<1x4x128xf32>
    %1 = vector.shape_cast %0 : vector<1x4x128xf32> to vector<4x128xf32>
    %c0_2 = arith.constant 0 : index
    %c0_3 = arith.constant 0 : index
    %2 = vector.load %arg3[%c0_2, %c0_3] : memref<32x4xf32, #tpu.memory_space<vmem>>, vector<32x4xf32>
    %cst = arith.constant dense<0.000000e+00> : vector<32x128xf32>
    %3 = tpu.matmul %2, %1, %cst {dimension_numbers = #tpu.dot_dimension_numbers<[1], [0], [0], [1], [0, 0, 1, 1], [], []>} : vector<32x4xf32>, vector<4x128xf32>, vector<32x128xf32> -> vector<32x128xf32>
    %c0_4 = arith.constant 0 : index
    %c0_5 = arith.constant 0 : index
    %4 = vector.load %arg4[%c0_4, %c0_5] : memref<32x1xf32, #tpu.memory_space<vmem>>, vector<32x1xf32>
    %5 = vector.broadcast %4 : vector<32x1xf32> to vector<32x128xf32>
    %6 = arith.addf %3, %5 : vector<32x128xf32>
    %cst_6 = arith.constant 0.000000e+00 : f32
    %7 = vector.broadcast %cst_6 : f32 to vector<32x128xf32>
    %8 = arith.maximumf %6, %7 : vector<32x128xf32>
    %c0_7 = arith.constant 0 : index
    %c0_8 = arith.constant 0 : index
    %9 = vector.load %arg5[%c0_7, %c0_8] : memref<4x32xf32, #tpu.memory_space<vmem>>, vector<4x32xf32>
    %cst_9 = arith.constant dense<0.000000e+00> : vector<4x128xf32>
    %10 = tpu.matmul %9, %8, %cst_9 {dimension_numbers = #tpu.dot_dimension_numbers<[1], [0], [0], [1], [0, 0, 1, 1], [], []>} : vector<4x32xf32>, vector<32x128xf32>, vector<4x128xf32> -> vector<4x128xf32>
    %c0_10 = arith.constant 0 : index
    %c0_11 = arith.constant 0 : index
    %11 = vector.load %arg6[%c0_10, %c0_11] : memref<4x1xf32, #tpu.memory_space<vmem>>, vector<4x1xf32>
    %12 = vector.broadcast %11 : vector<4x1xf32> to vector<4x128xf32>
    %13 = arith.addf %10, %12 : vector<4x128xf32>
    %c0_12 = arith.constant 0 : index
    %c0_13 = arith.constant 0 : index
    %c0_14 = arith.constant 0 : index
    %14 = vector.load %arg9[%c0_12, %c0_13, %c0_14] : memref<1x4x128xf32, #tpu.memory_space<vmem>>, vector<1x4x128xf32>
    %15 = vector.shape_cast %14 : vector<1x4x128xf32> to vector<4x128xf32>
    %16 = vector.shape_cast %13 : vector<4x128xf32> to vector<1x4x128xf32>
    tpu.vector_store %arg9[%c0_12, %c0_13, %c0_14], %16 {strides = array<i32>} : memref<1x4x128xf32, #tpu.memory_space<vmem>>, vector<1x4x128xf32>,
    %c0_i32 = arith.constant 0 : i32
    %17 = arith.cmpi eq, %arg1, %c0_i32 : i32
    %18 = arith.extui %17 : i1 to i32
    %c0_i32_15 = arith.constant 0 : i32
    %19 = arith.cmpi ne, %18, %c0_i32_15 : i32
    scf.if %19 {
      %cst_22 = arith.constant 0.000000e+00 : f32
      %28 = vector.broadcast %cst_22 : f32 to vector<4x1xf32>
      %c0_23 = arith.constant 0 : index
      %c0_24 = arith.constant 0 : index
      %29 = vector.load %arg11[%c0_23, %c0_24] : memref<4x1xf32, #tpu.memory_space<vmem>>, vector<4x1xf32>
      tpu.vector_store %arg11[%c0_23, %c0_24], %28 {strides = array<i32>} : memref<4x1xf32, #tpu.memory_space<vmem>>, vector<4x1xf32>,
    } else {
    }
    %c0_16 = arith.constant 0 : index
    %c0_17 = arith.constant 0 : index
    %20 = vector.load %arg11[%c0_16, %c0_17] : memref<4x1xf32, #tpu.memory_space<vmem>>, vector<4x1xf32>
    %cst_18 = arith.constant dense<0.000000e+00> : vector<4xf32>
    %21 = vector.multi_reduction <add>, %1, %cst_18 [1] : vector<4x128xf32> to vector<4xf32>
    %22 = vector.shape_cast %21 : vector<4xf32> to vector<4x1xf32>
    %23 = arith.addf %20, %22 : vector<4x1xf32>
    %c0_19 = arith.constant 0 : index
    %c0_20 = arith.constant 0 : index
    %24 = vector.load %arg11[%c0_19, %c0_20] : memref<4x1xf32, #tpu.memory_space<vmem>>, vector<4x1xf32>
    tpu.vector_store %arg11[%c0_19, %c0_20], %23 {strides = array<i32>} : memref<4x1xf32, #tpu.memory_space<vmem>>, vector<4x1xf32>,
    %c1_i32 = arith.constant 1 : i32
    %25 = arith.cmpi eq, %arg1, %c1_i32 : i32
    %26 = arith.extui %25 : i1 to i32
    %c0_i32_21 = arith.constant 0 : i32
    %27 = arith.cmpi ne, %26, %c0_i32_21 : i32
    scf.if %27 {
      %c0_22 = arith.constant 0 : index
      %c0_23 = arith.constant 0 : index
      %28 = vector.load %arg11[%c0_22, %c0_23] : memref<4x1xf32, #tpu.memory_space<vmem>>, vector<4x1xf32>
      %cst_24 = arith.constant 3.906250e-03 : f32
      %29 = vector.broadcast %cst_24 : f32 to vector<4x1xf32>
      %30 = arith.mulf %28, %29 : vector<4x1xf32>
      %c0_25 = arith.constant 0 : index
      %c0_26 = arith.constant 0 : index
      %31 = vector.load %arg7[%c0_25, %c0_26] : memref<4x4xf32, #tpu.memory_space<vmem>>, vector<4x4xf32>
      %cst_27 = arith.constant dense<0.000000e+00> : vector<4x1xf32>
      %32 = tpu.matmul %31, %30, %cst_27 {dimension_numbers = #tpu.dot_dimension_numbers<[1], [0], [0], [1], [0, 0, 1, 1], [], []>} : vector<4x4xf32>, vector<4x1xf32>, vector<4x1xf32> -> vector<4x1xf32>
      %c0_28 = arith.constant 0 : index
      %c0_29 = arith.constant 0 : index
      %33 = vector.load %arg8[%c0_28, %c0_29] : memref<4x1xf32, #tpu.memory_space<vmem>>, vector<4x1xf32>
      %34 = arith.addf %32, %33 : vector<4x1xf32>
      %35 = arith.negf %34 : vector<4x1xf32>
      %36 = math.exp %35 : vector<4x1xf32>
      %cst_30 = arith.constant 1.000000e+00 : f32
      %37 = vector.broadcast %cst_30 : f32 to vector<4x1xf32>
      %38 = arith.addf %37, %36 : vector<4x1xf32>
      %39 = arith.divf %37, %38 : vector<4x1xf32>
      %c0_31 = arith.constant 0 : index
      %c0_32 = arith.constant 0 : index
      %c0_33 = arith.constant 0 : index
      %40 = vector.load %arg10[%c0_31, %c0_32, %c0_33] : memref<1x4x1xf32, #tpu.memory_space<vmem>>, vector<1x4x1xf32>
      %41 = vector.shape_cast %40 : vector<1x4x1xf32> to vector<4x1xf32>
      %42 = vector.shape_cast %39 : vector<4x1xf32> to vector<1x4x1xf32>
      tpu.vector_store %arg10[%c0_31, %c0_32, %c0_33], %42 {strides = array<i32>} : memref<1x4x1xf32, #tpu.memory_space<vmem>>, vector<1x4x1xf32>,
    } else {
    }
    return
  }
  func.func @transform_0(%arg0: i32, %arg1: i32) -> (i32, i32, i32) {
    %c0_i32 = arith.constant 0 : i32
    %c0_i32_0 = arith.constant 0 : i32
    return %arg0, %c0_i32, %arg1 : i32, i32, i32
  }
  func.func @transform_1(%arg0: i32, %arg1: i32) -> (i32, i32) {
    %c0_i32 = arith.constant 0 : i32
    %c0_i32_0 = arith.constant 0 : i32
    %c0_i32_1 = arith.constant 0 : i32
    return %c0_i32, %c0_i32_0 : i32, i32
  }
  func.func @transform_2(%arg0: i32, %arg1: i32) -> (i32, i32) {
    %c0_i32 = arith.constant 0 : i32
    %c0_i32_0 = arith.constant 0 : i32
    %c0_i32_1 = arith.constant 0 : i32
    return %c0_i32, %c0_i32_0 : i32, i32
  }
  func.func @transform_3(%arg0: i32, %arg1: i32) -> (i32, i32) {
    %c0_i32 = arith.constant 0 : i32
    %c0_i32_0 = arith.constant 0 : i32
    %c0_i32_1 = arith.constant 0 : i32
    return %c0_i32, %c0_i32_0 : i32, i32
  }
  func.func @transform_4(%arg0: i32, %arg1: i32) -> (i32, i32) {
    %c0_i32 = arith.constant 0 : i32
    %c0_i32_0 = arith.constant 0 : i32
    %c0_i32_1 = arith.constant 0 : i32
    return %c0_i32, %c0_i32_0 : i32, i32
  }
  func.func @transform_5(%arg0: i32, %arg1: i32) -> (i32, i32) {
    %c0_i32 = arith.constant 0 : i32
    %c0_i32_0 = arith.constant 0 : i32
    %c0_i32_1 = arith.constant 0 : i32
    return %c0_i32, %c0_i32_0 : i32, i32
  }
  func.func @transform_6(%arg0: i32, %arg1: i32) -> (i32, i32) {
    %c0_i32 = arith.constant 0 : i32
    %c0_i32_0 = arith.constant 0 : i32
    %c0_i32_1 = arith.constant 0 : i32
    return %c0_i32, %c0_i32_0 : i32, i32
  }
  func.func @transform_7(%arg0: i32, %arg1: i32) -> (i32, i32, i32) {
    %c0_i32 = arith.constant 0 : i32
    %c0_i32_0 = arith.constant 0 : i32
    return %arg0, %c0_i32, %arg1 : i32, i32, i32
  }
  func.func @transform_8(%arg0: i32, %arg1: i32) -> (i32, i32, i32) {
    %c0_i32 = arith.constant 0 : i32
    %c0_i32_0 = arith.constant 0 : i32
    %c0_i32_1 = arith.constant 0 : i32
    return %arg0, %c0_i32, %c0_i32_0 : i32, i32, i32
  }
}

</mosaic_0001>

<bundles_post_ra>
// kernel: tpu_custom_call.1
= control target key start
LH: loop header
LB: loop body
LE: loop exit
PB: predicated region body
PF: predicated region fallthrough
CT: control target
= control target key end

     0   :  { %14 = vsyncpa [#allocation4], 0  ;;  %s1282_s0 = inlined_call_operand.vmem [shape: f32[2,4,256], index: 0, kind: input, shape index: {}]   ;;  %s1283_s1 = inlined_call_operand.vmem [shape: f32[32,4], index: 1, kind: input, shape index: {}]   ;;  %s1284_s2 = inlined_call_operand.vmem [shape: f32[32,1], index: 2, kind: input, shape index: {}]   ;;  %s1285_s3 = inlined_call_operand.vmem [shape: f32[4,32], index: 3, kind: input, shape index: {}]   ;;  %s1286_s4 = inlined_call_operand.vmem [shape: f32[4,1], index: 4, kind: input, shape index: {}]   ;;  %s1287_s5 = inlined_call_operand.vmem [shape: f32[4,4], index: 5, kind: input, shape index: {}]   ;;  %s1288_s6 = inlined_call_operand.vmem [shape: f32[4,1], index: 6, kind: input, shape index: {}]   ;;  %s1289_s7 = inlined_call_operand.hbm [shape: f32[2,4,256], index: 7, kind: output, shape index: {0}]   ;;  %s1290_s8 = inlined_call_operand.vmem [shape: f32[2,4,1], index: 8, kind: output, shape index: {1}]  }
   0x1   :  { %16 = vsyncpa [#allocation4 + $0x1], 0  ;;  %s1086_s27 = smov 0   ;;  %s1088_s28 = smov 0  }
   0x2   :  { %s1090_s29 = smov 0   ;;  %s1092_s30 = smov 0  }
   0x3   :  { %s1094_s9 = smov 0   ;;  %s1096_s10 = smov 0  }
   0x4   :  { %s1098_s11 = smov 0   ;;  %s1100_s12 = smov 0  }
   0x5 LB: > { %1296 = sst [smem:[#allocation6_spill]] %s1011_s29  ;;  %s786_s13 = sadd.s32 4294967295, %s1031_s12   ;;  %s1031_s12 = sphi %s1100_s12, %s22_s12   ;;  %s1027_s11 = sphi %s1098_s11, %s1309_s11   ;;  %s1023_s10 = sphi %s1096_s10, %s1308_s10   ;;  %s1019_s9 = sphi %s1094_s9, %s1307_s9   ;;  %s1015_s30 = sphi %s1092_s30, %s1306_s30   ;;  %s1011_s29 = sphi %s1090_s29, %s1305_s29   ;;  %s1007_s28 = sphi %s1088_s28, %s1311_s28   ;;  %s1003_s27 = sphi %s1086_s27, %s1310_s27  }
   0x6   : > { %1297 = sst [smem:[#allocation7_spill]] %s1023_s10  ;;  %s787_s14 = sadd.s32 4294967294, %s1031_s12  }
   0x7   : > { %1298 = sst [smem:[#allocation8_spill]] %s1027_s11  ;;  %s31_s15 = sadd.s32 1, %s1023_s10 }
   0x8   : > { %p32_p0 = scmp.ge.s32.totalorder %s31_s15, 2  ;;  %s34_s16 = sadd.s32 1, %s1027_s11 }
   0x9   : > { %p207_p1 = scmp.ne.s32.totalorder %s1011_s29, %s1007_s28  ;;  %p208_p2 = scmp.eq.s32.totalorder %s786_s13, 3 }
   0xa   : > { %s1313_s15 = smov (%p32_p0, %s31_s15), 0  ;;  %s1315_s16 = smov (!%p32_p0, %s34_s16), %s1027_s11 }
   0xb   : > { %1299 = sst [smem:[#allocation9_spill]] %s1313_s15  ;;  %s193_s17 = ssub.s32 %s1023_s10, %s1313_s15 }
   0xc   : > { %p1137_p3 = por %p208_p2, %p207_p1  ;;  %p36_p4 = scmp.ge.s32.totalorder %s1315_s16, 2 }
   0xd   : > { %p213_p5 = scmp.ne.s32.totalorder %s1007_s28, %s1003_s27  ;;  %p214_p6 = scmp.eq.s32.totalorder %s787_s14, 3 }
   0xe   : > { %p790_p7 = scmp.ge.s32.totalorder %s1031_s12, 1  ;;  %s1317_s16 = smov (%p36_p4, %s1315_s16), 0 }
   0xf   : > { %1301 = sst [smem:[#allocation10_spill]] %s1317_s16  ;;  %p1146_p8 = por %p214_p6, %p213_p5 }
  0x10   : > { %p287_p9 = scmp.lt.s32.totalorder %s1031_s12, 5  ;;  %s192_s20 = ssub.s32 %s1027_s11, %s1317_s16 }
  0x11   : > { %s197_s21 = sadd.s32 1, %s1011_s29  ;;  %s194_s22 = sor.u32 %s193_s17, %s192_s20 }
  0x12   : > { %p288_p10 = pnand %p790_p7, %p287_p9  ;;  %p195_p11 = scmp.eq.s32.totalorder %s194_s22, 0 }
  0x13   : > { %p328_p12 = scmp.lt.s32.totalorder (!%p288_p10), %s1019_s9, 1  ;;  %p330_p13 = scmp.lt.s32.totalorder (!%p288_p10), %s1015_s30, 1  ;;  %v341_v0 = vld [vmem:[%s1283_s1] sm:$0xff] (!%p288_p10)  ;;  %vm369_vm0 = vcmask (!%p288_p10), 31744   ;;  %v1033_v2 = vmov (!%p288_p10), 0   ;;  %v347_v3 = vld [vmem:[%s1284_s2 + $0x10] sm:$0xff] (!%p288_p10) }
  0x14   : > { %s1155_s23 = scalar_select %p195_p11, %s1011_s29, %s197_s21  }
  0x15   : > { %291 = sbr.rel (%p288_p10) target bundleno = 901 (0x385), region = 48  ;;  %825 = vmatprep.mubr.msk.f32.mxu0 (!%p288_p10), %vm369_vm0, %v341_v0  ;;  %v345_v1 = vld [vmem:[%s1284_s2] sm:$0xff] (!%p288_p10)  ;;  %931 = vset.pattern.permute.xlu0 (!%p288_p10), %v1033_v2  ;;  %v346_v4 = vld [vmem:[%s1284_s2 + $0x8] sm:$0xff] (!%p288_p10)  ;;  %v348_v5 = vld [vmem:[%s1284_s2 + $0x18] sm:$0xff] (!%p288_p10)  ;;  %vm382_vm1 = vcmask (!%p288_p10), 1043456   ;;  %v1034_v11 = vmov (!%p288_p10), 0.0|0.0  }
  0x16   : > { %1303 = sst [smem:[#allocation11_spill]] %s1155_s23  ;;  %932 = vset.pattern.permute.xlu1 (!%p288_p10), %v1033_v2  ;;  %351 = vperm.xlu0 (!%p288_p10), %931, %v345_v1   ;;  %v342_v7 = vld [vmem:[%s1283_s1 + $0x8] sm:$0xff] (!%p288_p10)  ;;  %v476_v8 = vld [vmem:[%s1286_s4] sm:$0xf] (!%p288_p10)  ;;  %v343_v9 = vld [vmem:[%s1283_s1 + $0x10] sm:$0xff] (!%p288_p10)  ;;  %vm1035_vm2 = vmmov (!%p288_p10), 0  }
  0x17   : > { %361 = vperm.xlu1 (!%p288_p10), %932, %v347_v3   ;;  %v344_v10 = vld [vmem:[%s1283_s1 + $0x18] sm:$0xff] (!%p288_p10)  ;;  %847 = vmatprep.subr.bf16.mxu1 (!%p288_p10), %v1034_v11  ;;  %v1036_v12 = vmov (!%p288_p10), 0.0   ;;  %v475_v31 = vld [vmem:[%s1285_s3] sm:$0xf] (!%p288_p10)  ;;  %vm482_vm3 = vcmask (!%p288_p10), 261120   ;;  %p801_p0 = scmp.ne.s32.totalorder (!%p288_p10), %s1015_s30, 0 }
  0x18   : > { %839 = vmatprep.mubr.msk.f32.mxu1 (!%p288_p10), %vm1035_vm2, %v1036_v12 }
  0x1a   : > { %356 = vperm.xlu0 (!%p288_p10), %931, %v346_v4  }
  0x1b   : > { %366 = vperm.xlu1 (!%p288_p10), %932, %v348_v5  }
  0x1c   : > { %s329_s14 = scalar_select %p328_p12, %s1019_s9, 1 }
  0x1d   : > { %s331_s21 = scalar_select %p330_p13, %s1015_s30, 1 }
  0x1e   : > { %s792_s22 = sshll.u32 %s329_s14, 1  ;;  %s794_s24 = sshll.u32 %s329_s14, 2  ;;  %479 = vperm.xlu0 %931, %v476_v8   ;;  %vm561_vm4 = vcmask (!%p801_p0), 3072   ;;  %v1037_v36 = vmov (!%p801_p0), 0.0  }
  0x1f   : > { %s333_s13 = sadd.s32 %s792_s22, %s331_s21  ;;  %s1180_s23 = scalar_lea.vmem %s1290_s8, %s794_s24  ;;  %562 = vst.msk [vmem:[#allocation2] sm:$0xf] (!%p801_p0), %vm561_vm4, %v1037_v36 }
  0x20   : > { %s793_s17 = sshll.u32 %s333_s13, 2  ;;  %s319_s13 = sand.u32 1, %s1007_s28  }
  0x21   : > { %s335_s14 = scalar_lea.vmem %s1282_s0, %s793_s17  ;;  %s1208_s17 = sshll.u32 %s319_s13, 2 }
  0x22   : > { %v340_v6 = vld [vmem:[%s335_s14] sm:$0xf]  ;;  %s321_s20 = scalar_lea.vmem [#allocation3], %s1208_s17 }
  0x23   : > { %823 = vmatprep.subr.msk.mxu0 %vm382_vm1, %v340_v6 }
  0x24   : > { %824 = vmatpush3.msk.msra.mxu0 %vm382_vm1, %v340_v6 }
  0x25   : > { %826 = vmatmul.mubr.msk.f32.vlgmr.msra.gmra.mrb[0].mxu0 %vm369_vm0, %v342_v7 }
  0x26   : > { %828 = vmatprep.mubr.msk.f32.mxu0 %vm369_vm0, %v343_v9 }
  0x29   : > { %829 = vmatmul.mubr.msk.f32.gmra.mrb[2].mxu0 %vm369_vm0, %v344_v10 }
  0x95   : > { %v352_v13 = vpop.permute.xlu0 %351 }
  0x96   : > { %v362_v14 = vpop.permute.xlu1 %361 }
  0x99   : > { %v357_v15 = vpop.permute.xlu0 %356 }
  0x9a   : > { %v367_v21 = vpop.permute.xlu1 %366 }
  0x9d   : > { %v480_v32 = vpop.permute.xlu0 %479 }
  0xf8   : > { %v827_v16 = vpop.f32.mrb[0].mxu0 }
  0xf9   : > { %v458_v17 = vadd.f32 %v827_v16, %v357_v15  ;;  %v452_v18 = vpop.f32.mrb[1].mxu0 }
  0xfa   : > { %v453_v19 = vadd.f32 %v452_v18, %v352_v13 }
  0xfb   : > { %v472_v20 = vmax.f32 %v458_v17, 0.0 }
  0xfc   : > { %v471_v22 = vmax.f32 %v453_v19, 0.0  ;;  %v830_v23 = vpop.f32.mrb[2].mxu0 }
  0xfd   : > { %v468_v24 = vadd.f32 %v830_v23, %v367_v21  ;;  %v462_v25 = vpop.f32.mrb[3].mxu0 }
  0xfe   : > { %v463_v26 = vadd.f32 %v462_v25, %v362_v14  ;;  %v848_v27 = vpack.c.bf16 %v472_v20, %v471_v22 }
  0xff   : > { %v474_v28 = vmax.f32 %v468_v24, 0.0 }
 0x100   : > { %v473_v29 = vmax.f32 %v463_v26, 0.0  ;;  %849 = vmatpush3.bf16.msra.mxu1 %v848_v27 }
 0x101   : > { %850 = vmatprep.subr.bf16.mxu1 %v1034_v11 }
 0x102   : > { %v851_v30 = vpack.c.bf16 %v474_v28, %v473_v29 }
 0x104   : > { %852 = vmatpush3.bf16.msra.mxu1 %v851_v30 }
 0x107   : > { %840 = vmatmul.mubr.msk.f32.vlgmr.msra.gmra.mrb[0].mxu1 %vm482_vm3, %v475_v31 }
 0x1d7   : > { %560 = sbr.rel (%p801_p0) target bundleno = 478 (0x1de), region = 52 }
 0x1da   : > { %v552_v33 = vpop.f32.mrb[0].mxu1 }
 0x1db   : > { %v553_v34 = vadd.f32 %v552_v33, %v480_v32  ;;  %v841_v35 = vpop.f32.mrb[1].mxu1 }
 0x1dd   : > { %556 = vst [vmem:[%s321_s20] sm:$0xf] %v553_v34 }
 0x1de PF: > { %v564_v37 = vsel %vm382_vm1, %v340_v6, 0.0  ;;  %v563_v38 = vld [vmem:[#allocation2] sm:$0xf]  ;;  %vm568_vm5 = vcmask 3072   ;;  %p802_p1 = scmp.ne.s32.totalorder %s1015_s30, 1 }
 0x1df   : > { %565 = vadd.xlane.f32.xlu0 %v564_v37  ;;  %v1038_v42 = vmov (!%p802_p1), 0.0   ;;  %vm1039_vm6 = vmmov (!%p802_p1), 0   ;;  %v576_v44 = vld [vmem:[%s1287_s5] sm:$0xf] (!%p802_p1) }
 0x1e0   : > { %842 = vmatprep.subr.mxu0 (!%p802_p1), %v1038_v42  ;;  %844 = vmatprep.mubr.msk.f32.mxu0 (!%p802_p1), %vm1039_vm6, %v1038_v42  ;;  %v577_v45 = vld [vmem:[%s1288_s6] sm:$0xf] (!%p802_p1) }
 0x269   : > { %573 = sbr.rel (%p802_p1) target bundleno = 875 (0x36b), region = 56 }
 0x26c   : > { %v566_v39 = vpop.xlane.xlu0 %565 }
 0x26d   : > { %v567_v40 = vadd.f32 %v566_v39, %v563_v38 }
 0x26f   : > { %569 = vst.msk [vmem:[#allocation2] sm:$0xf] %vm568_vm5, %v567_v40 }
 0x276   : > { %v574_v41 = vld [vmem:[#allocation2] sm:$0xf] }
 0x277   : > { %v575_v43 = vmul.f32 0.00390625, %v574_v41 }
 0x279   : > { %843 = vmatpush3.msk.msra.mxu0 %vm382_vm1, %v575_v43 }
 0x27a   : > { %845 = vmatmul.mubr.msk.f32.vlgmr.msra.gmra.mrb[0].mxu0 %vm369_vm0, %v576_v44 }
 0x34d   : > { %v650_v46 = vpop.f32.mrb[0].mxu0 }
 0x34e   : > { %v651_v47 = vadd.f32 %v650_v46, %v577_v45  ;;  %v846_v48 = vpop.f32.mrb[1].mxu0 }
 0x350   : > { %v805_v49 = vmul.f32 -1.442695, %v651_v47 }
 0x352   : > { %933 = vpow2.f32 %v805_v49 }
 0x35c   : > { %v934_v50 = vpop.eup %933 }
 0x35d   : > { %v657_v51 = vadd.f32 1.0, %v934_v50 }
 0x35f   : > { %935 = vrcp.f32 %v657_v51 }
 0x369   : > { %v936_v52 = vpop.eup %935 }
 0x36a   : > { %660 = vst.msk [vmem:[%s1180_s23] sm:$0xf] %vm568_vm5, %v936_v52 }
 0x36b PF: > { %s807_s21 = sshll.u32 %s1019_s9, 1  ;;  %s681_s11 = sshll.u32 %s321_s20, 4  ;;  %s1231_s11 = int_to_ptr.vmem [resolvable:$true] %s681_s11 }
 0x36c   : > { %s677_s10 = sadd.s32 %s1015_s30, %s807_s21  ;;  %s662_s26 = scalar_lea.sflag [#allocation4], %s319_s13 }
 0x36d   : > { %s808_s29 = sshll.u32 %s677_s10, 6  ;;  %s937_s14 = scalar_lea.vmem %s1231_s11, 64 }
 0x36e   : > { %s679_s23 = scalar_lea.hbm %s1289_s7, %s808_s29  ;;  %p938_p2 = scmp.ne.s32.totalorder %s1231_s11, %s937_s14 }
 0x36f   : > { %s1040_s30 = smov [#allocation3]  }
 0x370   : > { %p939_p4 = pnand %p938_p2, %p1137_p3  ;;  %s941_s9 = sshll.u32 %s1040_s30, 4  ;;  %s942_s9 = int_to_ptr.vmem [resolvable:$false] %s941_s9 }
 0x371   : > { %s943_s17 = scalar_lea.vmem %s942_s9, 128  ;;  %p944_p6 = scmp.lt.s32.totalorder %s1231_s11, %s942_s9 }
 0x372   : > { %p940_p5 = pneg %p939_p4  ;;  %p945_p7 = scmp.lt.s32.totalorder %s943_s17, %s937_s14 }
 0x374   : > { %p946_p9 = por %p945_p7, %p944_p6 }
 0x376   : > { %p947_p10 = pnand %p946_p9, %p940_p5 }
 0x378   : > { %950 = shalt.err (!%p947_p10)
}
 0x379   : > { %s951_s20 = scalar_lea.hbm %s679_s23, 64  ;;  %s955_s25 = scalar_lea.hbm %s1289_s7, 256 }
 0x37a   : > { %p952_p11 = scmp.ne.s32.totalorder %s679_s23, %s951_s20  ;;  %p956_p0 = scmp.lt.u32.totalorder %s679_s23, %s1289_s7 }
 0x37b   : > { %p957_p1 = scmp.lt.u32.totalorder %s955_s25, %s951_s20  ;;  %p959_p4 = scmp.lt.u32.totalorder %s951_s20, %s679_s23 }
 0x37c   : > { %p953_p12 = pnand %p952_p11, %p1137_p3 }
 0x37d   : > { %p958_p2 = por %p957_p1, %p956_p0 }
 0x37e   : > { %p954_p13 = pneg %p953_p12 }
 0x37f   : > { %p960_p6 = por %p959_p4, %p958_p2 }
 0x381   : > { %p961_p5 = pnand %p960_p6, %p954_p13 }
 0x383   : > { %964 = shalt.err (!%p961_p5)
}
 0x384   : > { %853 = dma.vmem_to_hbm [thread:$0]  (%p1137_p3), %s1231_s11, 64, %s679_s23, %s662_s26  }
 0x385 PF: > { %p859_p7 = scmp.ge.s32.totalorder %s1031_s12, 2  ;;  %s696_s10 = sand.u32 1, %s1003_s27  }
 0x386   : > { %s697_s29 = scalar_lea.sflag [#allocation4], %s696_s10 }
 0x387   : > { %p856_p9 = pnand %p859_p7, %p1146_p8 }
 0x389   : > { %998 = dma.done.wait (!%p856_p9), %s697_s29, 64  }
 0x38a   : > { %1000 = vsyncadd (!%p856_p9), %s697_s29, 4294967232  ;;  %s22_s12 = sadd.s32 1, %s1031_s12   ;;  %s1304_s22 = sld [smem:[#allocation6_spill]] }
 0x38b   : > { %p19_p10 = scmp.ge.s32.totalorder %s22_s12, 6   ;;  %s1305_s29 = sld [smem:[#allocation11_spill]] }
 0x38c   : > { %s1306_s30 = sld [smem:[#allocation7_spill]]  ;;  %s1307_s9 = sld [smem:[#allocation8_spill]] }
 0x38d   : > { %s1308_s10 = sld [smem:[#allocation9_spill]]  ;;  %s1309_s11 = sld [smem:[#allocation10_spill]] }
 0x38e   : > { %s1310_s27 = smov %s1007_s28  ;;  %21 = sbr.rel (!%p19_p10) target bundleno = 5 (0x5), region = 103 }
 0x390   : > { %s1311_s28 = smov %s1304_s22 }
 0x395   :  { %709 = vsyncpa [#allocation4], 1 }
 0x396   :  { %711 = vsyncpa [#allocation4 + $0x1], 1 }

</bundles_post_ra>
